<compile_context>
chip_gen: v7x
topology: tpu7x:2x2x1
jax: 0.10.0
libtpu: 0.0.40
codegen_flags: <defaults>
</compile_context>

<pallas_src>
import numpy as np
import jax
import jax.numpy as jnp
from jax import lax
from jax.experimental import pallas as pl
from jax.experimental.pallas import tpu as pltpu


# --------------------------------------------------------------------------
# helpers
# --------------------------------------------------------------------------

_ROW_ALIGN = 16   # sublane alignment (covers bf16 packing: 16 rows / vreg)
_LANE_ALIGN = 128


def _round_up(n, m):
    return ((n + m - 1) // m) * m


def _pad2d(a, rows, cols):
    r, c = a.shape
    if r == rows and c == cols:
        return a
    return jnp.pad(a, ((0, rows - r), (0, cols - c)))


# --------------------------------------------------------------------------
# fused attention kernel
# --------------------------------------------------------------------------

def _make_fused_attention_kernel(*, heads, dim_head, bt, b_ctx_pad, scale,
                                 project_out, compute_dtype):
    """Builds the fused (q-proj + kv-proj + attention + out-proj) kernel."""
    h, d = heads, dim_head
    inner = h * d

    def kernel(*refs):
        if project_out:
            (x_ref, ctx_ref, kbias_ref, wq_ref, wkv_ref, wout_ref, bout_ref,
             o_ref, q_full, kv_full, q_hm, k_hm, v_hm, o_pk) = refs
        else:
            (x_ref, ctx_ref, kbias_ref, wq_ref, wkv_ref,
             o_ref, q_full, kv_full, q_hm, k_hm, v_hm) = refs

        i = pl.program_id(0)

        # ---- K/V projection: computed once (grid step 0), kept resident in
        # VMEM scratch for every query tile (no HBM round-trip, no recompute).
        @pl.when(i == 0)
        def _():
            kv = jnp.dot(ctx_ref[...].astype(compute_dtype), wkv_ref[...],
                         preferred_element_type=jnp.float32)      # (Bc, 2*inner)
            kv_full[...] = kv.astype(compute_dtype)
            # repack 'b (h d)' -> head-major '(h b) d' (aligned ref slices only)
            for j in range(h):
                k_hm[j * b_ctx_pad:(j + 1) * b_ctx_pad, :] = \
                    kv_full[:, j * d:(j + 1) * d]
                v_hm[j * b_ctx_pad:(j + 1) * b_ctx_pad, :] = \
                    kv_full[:, inner + j * d: inner + (j + 1) * d]

        # ---- Q projection for this batch tile; scale folded into q.
        q = jnp.dot(x_ref[...].astype(compute_dtype), wq_ref[...],
                    preferred_element_type=jnp.float32)            # (bt, inner)
        q_full[...] = (q * scale).astype(compute_dtype)
        for j in range(h):
            q_hm[j * bt:(j + 1) * bt, :] = q_full[:, j * d:(j + 1) * d]

        # ---- sim = (q*scale) @ k^T over the flattened (batch*heads) key axis.
        # dot_general contracts the last dims directly (no in-kernel k.T).
        sim = lax.dot_general(q_hm[...], k_hm[...],
                              (((1,), (1,)), ((), ())),
                              preferred_element_type=jnp.float32)  # (h*bt, h*Bc)
        sim = sim + kbias_ref[...]          # -1e30 on padded key columns
        # TODO(synk): the module's optional `mask` (masked_fill) would plug in
        # here as another additive bias; not wired.

        sim = sim - jnp.max(sim, axis=-1, keepdims=True)           # stable softmax
        p = jnp.exp(sim)
        attn = p * pl.reciprocal(jnp.sum(p, axis=-1, keepdims=True), approx=True)

        out_hm = jnp.dot(attn.astype(compute_dtype), v_hm[...],
                         preferred_element_type=jnp.float32)       # (h*bt, d)

        # ---- back to 'b (h d)' layout (+ output projection with hoisted bias).
        if project_out:
            for j in range(h):
                o_pk[:, j * d:(j + 1) * d] = \
                    out_hm[j * bt:(j + 1) * bt, :].astype(compute_dtype)
            y = jnp.dot(o_pk[...], wout_ref[...],
                        preferred_element_type=jnp.float32) + bout_ref[...]
            o_ref[...] = y.astype(o_ref.dtype)
        else:
            for j in range(h):
                o_ref[:, j * d:(j + 1) * d] = \
                    out_hm[j * bt:(j + 1) * bt, :].astype(o_ref.dtype)

    return kernel


# --------------------------------------------------------------------------
# module port
# --------------------------------------------------------------------------

class AttentionPallas:
    """JAX/Pallas port of the PyTorch Attention module (eval mode)."""

    def __init__(self, query_dim, context_dim=None, heads=8, dim_head=64,
                 dropout_rate=0.0, *, key, compute_dtype=jnp.bfloat16):
        inner_dim = dim_head * heads
        context_dim = query_dim if context_dim is None else context_dim
        self.query_dim = query_dim
        self.context_dim = context_dim
        self.heads = heads
        self.dim_head = dim_head
        self.inner_dim = inner_dim
        self.scale = float(dim_head) ** -0.5
        self.project_out = not (heads == 1 and dim_head == query_dim)
        self.compute_dtype = compute_dtype
        self.dropout_rate = dropout_rate   # 0.0 / eval -> identity

        kq, kkv, kw, kb = jax.random.split(key, 4)

        def uinit(k, shape, fan_in):       # nn.Linear default init
            bound = 1.0 / float(np.sqrt(fan_in))
            return jax.random.uniform(k, shape, jnp.float32, -bound, bound)

        # float32 masters in PyTorch (out, in) layout -- used by the reference.
        self.w_q = uinit(kq, (inner_dim, query_dim), query_dim)
        self.w_kv = uinit(kkv, (2 * inner_dim, context_dim), context_dim)
        if self.project_out:
            self.w_out = uinit(kw, (query_dim, inner_dim), inner_dim)
            self.b_out = uinit(kb, (query_dim,), inner_dim)

        # Kernel-side copies: transposed ONCE to (in, out), zero-padded to
        # lane-aligned shapes, cast to the MXU compute dtype.
        self._dq_in_pad = _round_up(query_dim, _LANE_ALIGN)
        self._dc_in_pad = _round_up(context_dim, _LANE_ALIGN)
        self._dq_out_pad = _round_up(query_dim, _LANE_ALIGN)

        self.wq_t = _pad2d(self.w_q.T, self._dq_in_pad,
                           inner_dim).astype(compute_dtype)
        self.wkv_t = _pad2d(self.w_kv.T, self._dc_in_pad,
                            2 * inner_dim).astype(compute_dtype)
        if self.project_out:
            self.wout_t = _pad2d(self.w_out.T, inner_dim,
                                 self._dq_out_pad).astype(compute_dtype)
            self.b_out_p = _pad2d(self.b_out.reshape(1, -1), 1,
                                  self._dq_out_pad)          # keep bias in f32

    def __call__(self, x, context=None, mask=None):
        if mask is not None:
            # TODO(synk): mask path (masked_fill with -finfo.max) not wired;
            # the additive kbias below is the natural place to add it.
            raise NotImplementedError("mask is not supported")

        B, _ = x.shape
        h, d, inner = self.heads, self.dim_head, self.inner_dim
        cdt = self.compute_dtype

        # --- pad/tile query rows (padded query rows are sliced off below).
        bt = min(128, _round_up(B, _ROW_ALIGN))
        b_pad = _round_up(B, bt)
        x_p = _pad2d(x, b_pad, self._dq_in_pad)

        # --- context (padded key rows are neutralized by the additive kbias).
        if context is None:
            ctx_p = x_p
            b_ctx = B
        else:
            b_ctx = context.shape[0]
            ctx_p = _pad2d(context, _round_up(b_ctx, _ROW_ALIGN),
                           self._dc_in_pad)
        b_ctx_pad = ctx_p.shape[0]

        # additive bias over the head-major key axis: 0 on real keys, -1e30
        # on padded key columns.
        valid = np.arange(b_ctx_pad) < b_ctx
        kbias = np.where(np.tile(valid, h), 0.0, -1e30).astype(np.float32)
        kbias = jnp.asarray(kbias.reshape(1, h * b_ctx_pad))

        out_cols = self._dq_out_pad if self.project_out else inner

        kernel = _make_fused_attention_kernel(
            heads=h, dim_head=d, bt=bt, b_ctx_pad=b_ctx_pad, scale=self.scale,
            project_out=self.project_out, compute_dtype=cdt)

        resident = lambda i: (0, 0)   # weights / context / kbias stay in VMEM
        in_specs = [
            pl.BlockSpec((bt, self._dq_in_pad), lambda i: (i, 0)),   # x tile
            pl.BlockSpec((b_ctx_pad, ctx_p.shape[1]), resident),     # context
            pl.BlockSpec((1, h * b_ctx_pad), resident),              # key bias
            pl.BlockSpec((ctx_p.shape[1] if False else self._dq_in_pad, inner),
                         resident) if False else
            pl.BlockSpec((self._dq_in_pad, inner), resident),        # w_q
            pl.BlockSpec((ctx_p.shape[1], 2 * inner), resident),     # w_kv
        ]
        args = [x_p, ctx_p, kbias, self.wq_t, self.wkv_t]
        scratch = [
            pltpu.VMEM((bt, inner), cdt),              # q   (packed 'b (h d)')
            pltpu.VMEM((b_ctx_pad, 2 * inner), cdt),   # kv  (packed)
            pltpu.VMEM((h * bt, d), cdt),              # q   (head-major)
            pltpu.VMEM((h * b_ctx_pad, d), cdt),       # k   (head-major)
            pltpu.VMEM((h * b_ctx_pad, d), cdt),       # v   (head-major)
        ]
        if self.project_out:
            in_specs += [pl.BlockSpec((inner, self._dq_out_pad), resident),
                         pl.BlockSpec((1, self._dq_out_pad), resident)]
            args += [self.wout_t, self.b_out_p]
            scratch += [pltpu.VMEM((bt, inner), cdt)]  # attn output (packed)

        out = pl.pallas_call(
            kernel,
            grid=(b_pad // bt,),
            in_specs=in_specs,
            out_specs=pl.BlockSpec((bt, out_cols), lambda i: (i, 0)),
            out_shape=jax.ShapeDtypeStruct((b_pad, out_cols), jnp.float32),
            scratch_shapes=scratch,
            compiler_params=pltpu.CompilerParams(
                # K/V are computed at step 0 and kept resident in scratch, so
                # the batch-tile axis carries a dependency -> "arbitrary".
                dimension_semantics=("arbitrary",)),
        )(*args)

        cols = self.query_dim if self.project_out else inner
        return out[:B, :cols]


# --------------------------------------------------------------------------
# pure-jnp reference (float32, unpadded) -- mirrors the PyTorch forward
# --------------------------------------------------------------------------

def reference_forward(mod, x, context=None):
    ctx = x if context is None else context
    q = x @ mod.w_q.T
    kv = ctx @ mod.w_kv.T
    k, v = kv[:, :mod.inner_dim], kv[:, mod.inner_dim:]
    b = x.shape[0]
    h, d = mod.heads, mod.dim_head
    qr = q.reshape(b * h, d)
    kr = k.reshape(ctx.shape[0] * h, d)
    vr = v.reshape(ctx.shape[0] * h, d)
    sim = (qr @ kr.T) * mod.scale
    attn = jax.nn.softmax(sim, axis=-1)
    out = (attn @ vr).reshape(b, mod.inner_dim)
    if mod.project_out:
        out = out @ mod.w_out.T + mod.b_out
    return out


# --------------------------------------------------------------------------
# main
# --------------------------------------------------------------------------

if __name__ == "__main__":
    key = jax.random.PRNGKey(0)
    k_param, k_x = jax.random.split(key)

    # small shapes consistent with the module: x is (batch, query_dim)
    batch, query_dim, heads, dim_head = 2, 32, 4, 32
    mod = AttentionPallas(query_dim=query_dim, heads=heads, dim_head=dim_head,
                          dropout_rate=0.0, key=k_param)

    x = jax.random.normal(k_x, (batch, query_dim), dtype=jnp.float32)

    out = jax.block_until_ready(mod(x, context=None, mask=None))
    ref = jax.block_until_ready(reference_forward(mod, x))

    # bf16 MXU operands + approx reciprocal -> loosened tolerance
    # (softmax and all accumulation remain in float32).
    np.testing.assert_allclose(np.asarray(out), np.asarray(ref),
                               rtol=3e-2, atol=3e-2)
    print("KERNEL_OK")
</pallas_src>

<mosaic_0001>
module attributes {stable_mosaic.version = 11 : i64} {
  func.func @kernel(%arg0: i32, %arg1: memref<16x128xf32, #tpu.memory_space<vmem>>, %arg2: memref<16x128xf32, #tpu.memory_space<vmem>>, %arg3: memref<1x64xf32, #tpu.memory_space<vmem>>, %arg4: memref<128x128xbf16, #tpu.memory_space<vmem>>, %arg5: memref<128x256xbf16, #tpu.memory_space<vmem>>, %arg6: memref<128x128xbf16, #tpu.memory_space<vmem>>, %arg7: memref<1x128xf32, #tpu.memory_space<vmem>>, %arg8: memref<16x128xf32, #tpu.memory_space<vmem>>, %arg9: memref<16x128xbf16, #tpu.memory_space<vmem>>, %arg10: memref<16x256xbf16, #tpu.memory_space<vmem>>, %arg11: memref<64x32xbf16, #tpu.memory_space<vmem>>, %arg12: memref<64x32xbf16, #tpu.memory_space<vmem>>, %arg13: memref<64x32xbf16, #tpu.memory_space<vmem>>, %arg14: memref<16x128xbf16, #tpu.memory_space<vmem>>) attributes {dimension_semantics = [#tpu.dimension_semantics<arbitrary>], iteration_bounds = array<i64: 1>, scalar_prefetch = 0 : i64, scratch_operands = 6 : i64, tpu.core_type = #tpu.core_type<tc>, window_params = [{transform_indices = @transform_0, window_bounds = array<i64: 16, 128>}, {pipeline_mode = #tpu.pipeline_mode<synchronous>, transform_indices = @transform_1, window_bounds = array<i64: 16, 128>}, {pipeline_mode = #tpu.pipeline_mode<synchronous>, transform_indices = @transform_2, window_bounds = array<i64: 1, 64>}, {pipeline_mode = #tpu.pipeline_mode<synchronous>, transform_indices = @transform_3, window_bounds = array<i64: 128, 128>}, {pipeline_mode = #tpu.pipeline_mode<synchronous>, transform_indices = @transform_4, window_bounds = array<i64: 128, 256>}, {pipeline_mode = #tpu.pipeline_mode<synchronous>, transform_indices = @transform_5, window_bounds = array<i64: 128, 128>}, {pipeline_mode = #tpu.pipeline_mode<synchronous>, transform_indices = @transform_6, window_bounds = array<i64: 1, 128>}, {transform_indices = @transform_7, window_bounds = array<i64: 16, 128>}]} {
    %c0_i32 = arith.constant 0 : i32
    %0 = arith.cmpi eq, %arg0, %c0_i32 : i32
    %1 = arith.extui %0 : i1 to i32
    %c0_i32_0 = arith.constant 0 : i32
    %2 = arith.cmpi ne, %1, %c0_i32_0 : i32
    scf.if %2 {
      %c0_47 = arith.constant 0 : index
      %c0_48 = arith.constant 0 : index
      %57 = vector.load %arg2[%c0_47, %c0_48] : memref<16x128xf32, #tpu.memory_space<vmem>>, vector<16x128xf32>
      %58 = arith.truncf %57 : vector<16x128xf32> to vector<16x128xbf16>
      %c0_49 = arith.constant 0 : index
      %c0_50 = arith.constant 0 : index
      %59 = vector.load %arg5[%c0_49, %c0_50] : memref<128x256xbf16, #tpu.memory_space<vmem>>, vector<128x256xbf16>
      %cst_51 = arith.constant dense<0.000000e+00> : vector<16x256xf32>
      %60 = tpu.matmul %58, %59, %cst_51 {dimension_numbers = #tpu.dot_dimension_numbers<[1], [0], [0], [1], [0, 0, 1, 1], [], []>} : vector<16x128xbf16>, vector<128x256xbf16>, vector<16x256xf32> -> vector<16x256xf32>
      %61 = arith.truncf %60 : vector<16x256xf32> to vector<16x256xbf16>
      %c0_52 = arith.constant 0 : index
      %c0_53 = arith.constant 0 : index
      %62 = vector.load %arg10[%c0_52, %c0_53] : memref<16x256xbf16, #tpu.memory_space<vmem>>, vector<16x256xbf16>
      tpu.vector_store %arg10[%c0_52, %c0_53], %61 {strides = array<i32>} : memref<16x256xbf16, #tpu.memory_space<vmem>>, vector<16x256xbf16>,
      %c0_54 = arith.constant 0 : index
      %c0_55 = arith.constant 0 : index
      %63 = vector.load %arg10[%c0_54, %c0_55] : memref<16x256xbf16, #tpu.memory_space<vmem>>, vector<16x32xbf16>
      %c0_56 = arith.constant 0 : index
      %c0_57 = arith.constant 0 : index
      %64 = vector.load %arg12[%c0_56, %c0_57] : memref<64x32xbf16, #tpu.memory_space<vmem>>, vector<16x32xbf16>
      tpu.vector_store %arg12[%c0_56, %c0_57], %63 {strides = array<i32>} : memref<64x32xbf16, #tpu.memory_space<vmem>>, vector<16x32xbf16>,
      %c0_58 = arith.constant 0 : index
      %c128 = arith.constant 128 : index
      %65 = vector.load %arg10[%c0_58, %c128] : memref<16x256xbf16, #tpu.memory_space<vmem>>, vector<16x32xbf16>
      %c0_59 = arith.constant 0 : index
      %c0_60 = arith.constant 0 : index
      %66 = vector.load %arg13[%c0_59, %c0_60] : memref<64x32xbf16, #tpu.memory_space<vmem>>, vector<16x32xbf16>
      tpu.vector_store %arg13[%c0_59, %c0_60], %65 {strides = array<i32>} : memref<64x32xbf16, #tpu.memory_space<vmem>>, vector<16x32xbf16>,
      %c0_61 = arith.constant 0 : index
      %c32_62 = arith.constant 32 : index
      %67 = vector.load %arg10[%c0_61, %c32_62] : memref<16x256xbf16, #tpu.memory_space<vmem>>, vector<16x32xbf16>
      %c16_63 = arith.constant 16 : index
      %c0_64 = arith.constant 0 : index
      %68 = vector.load %arg12[%c16_63, %c0_64] : memref<64x32xbf16, #tpu.memory_space<vmem>>, vector<16x32xbf16>
      tpu.vector_store %arg12[%c16_63, %c0_64], %67 {strides = array<i32>} : memref<64x32xbf16, #tpu.memory_space<vmem>>, vector<16x32xbf16>,
      %c0_65 = arith.constant 0 : index
      %c160 = arith.constant 160 : index
      %69 = vector.load %arg10[%c0_65, %c160] : memref<16x256xbf16, #tpu.memory_space<vmem>>, vector<16x32xbf16>
      %c16_66 = arith.constant 16 : index
      %c0_67 = arith.constant 0 : index
      %70 = vector.load %arg13[%c16_66, %c0_67] : memref<64x32xbf16, #tpu.memory_space<vmem>>, vector<16x32xbf16>
      tpu.vector_store %arg13[%c16_66, %c0_67], %69 {strides = array<i32>} : memref<64x32xbf16, #tpu.memory_space<vmem>>, vector<16x32xbf16>,
      %c0_68 = arith.constant 0 : index
      %c64_69 = arith.constant 64 : index
      %71 = vector.load %arg10[%c0_68, %c64_69] : memref<16x256xbf16, #tpu.memory_space<vmem>>, vector<16x32xbf16>
      %c32_70 = arith.constant 32 : index
      %c0_71 = arith.constant 0 : index
      %72 = vector.load %arg12[%c32_70, %c0_71] : memref<64x32xbf16, #tpu.memory_space<vmem>>, vector<16x32xbf16>
      tpu.vector_store %arg12[%c32_70, %c0_71], %71 {strides = array<i32>} : memref<64x32xbf16, #tpu.memory_space<vmem>>, vector<16x32xbf16>,
      %c0_72 = arith.constant 0 : index
      %c192 = arith.constant 192 : index
      %73 = vector.load %arg10[%c0_72, %c192] : memref<16x256xbf16, #tpu.memory_space<vmem>>, vector<16x32xbf16>
      %c32_73 = arith.constant 32 : index
      %c0_74 = arith.constant 0 : index
      %74 = vector.load %arg13[%c32_73, %c0_74] : memref<64x32xbf16, #tpu.memory_space<vmem>>, vector<16x32xbf16>
      tpu.vector_store %arg13[%c32_73, %c0_74], %73 {strides = array<i32>} : memref<64x32xbf16, #tpu.memory_space<vmem>>, vector<16x32xbf16>,
      %c0_75 = arith.constant 0 : index
      %c96_76 = arith.constant 96 : index
      %75 = vector.load %arg10[%c0_75, %c96_76] : memref<16x256xbf16, #tpu.memory_space<vmem>>, vector<16x32xbf16>
      %c48_77 = arith.constant 48 : index
      %c0_78 = arith.constant 0 : index
      %76 = vector.load %arg12[%c48_77, %c0_78] : memref<64x32xbf16, #tpu.memory_space<vmem>>, vector<16x32xbf16>
      tpu.vector_store %arg12[%c48_77, %c0_78], %75 {strides = array<i32>} : memref<64x32xbf16, #tpu.memory_space<vmem>>, vector<16x32xbf16>,
      %c0_79 = arith.constant 0 : index
      %c224 = arith.constant 224 : index
      %77 = vector.load %arg10[%c0_79, %c224] : memref<16x256xbf16, #tpu.memory_space<vmem>>, vector<16x32xbf16>
      %c48_80 = arith.constant 48 : index
      %c0_81 = arith.constant 0 : index
      %78 = vector.load %arg13[%c48_80, %c0_81] : memref<64x32xbf16, #tpu.memory_space<vmem>>, vector<16x32xbf16>
      tpu.vector_store %arg13[%c48_80, %c0_81], %77 {strides = array<i32>} : memref<64x32xbf16, #tpu.memory_space<vmem>>, vector<16x32xbf16>,
    } else {
    }
    %c0 = arith.constant 0 : index
    %c0_1 = arith.constant 0 : index
    %3 = vector.load %arg1[%c0, %c0_1] : memref<16x128xf32, #tpu.memory_space<vmem>>, vector<16x128xf32>
    %4 = arith.truncf %3 : vector<16x128xf32> to vector<16x128xbf16>
    %c0_2 = arith.constant 0 : index
    %c0_3 = arith.constant 0 : index
    %5 = vector.load %arg4[%c0_2, %c0_3] : memref<128x128xbf16, #tpu.memory_space<vmem>>, vector<128x128xbf16>
    %cst = arith.constant dense<0.000000e+00> : vector<16x128xf32>
    %6 = tpu.matmul %4, %5, %cst {dimension_numbers = #tpu.dot_dimension_numbers<[1], [0], [0], [1], [0, 0, 1, 1], [], []>} : vector<16x128xbf16>, vector<128x128xbf16>, vector<16x128xf32> -> vector<16x128xf32>
    %cst_4 = arith.constant 0.176776692 : f32
    %7 = vector.broadcast %cst_4 : f32 to vector<16x128xf32>
    %8 = arith.mulf %6, %7 : vector<16x128xf32>
    %9 = arith.truncf %8 : vector<16x128xf32> to vector<16x128xbf16>
    %c0_5 = arith.constant 0 : index
    %c0_6 = arith.constant 0 : index
    %10 = vector.load %arg9[%c0_5, %c0_6] : memref<16x128xbf16, #tpu.memory_space<vmem>>, vector<16x128xbf16>
    tpu.vector_store %arg9[%c0_5, %c0_6], %9 {strides = array<i32>} : memref<16x128xbf16, #tpu.memory_space<vmem>>, vector<16x128xbf16>,
    %c0_7 = arith.constant 0 : index
    %c0_8 = arith.constant 0 : index
    %11 = vector.load %arg9[%c0_7, %c0_8] : memref<16x128xbf16, #tpu.memory_space<vmem>>, vector<16x32xbf16>
    %c0_9 = arith.constant 0 : index
    %c0_10 = arith.constant 0 : index
    %12 = vector.load %arg11[%c0_9, %c0_10] : memref<64x32xbf16, #tpu.memory_space<vmem>>, vector<16x32xbf16>
    tpu.vector_store %arg11[%c0_9, %c0_10], %11 {strides = array<i32>} : memref<64x32xbf16, #tpu.memory_space<vmem>>, vector<16x32xbf16>,
    %c0_11 = arith.constant 0 : index
    %c32 = arith.constant 32 : index
    %13 = vector.load %arg9[%c0_11, %c32] : memref<16x128xbf16, #tpu.memory_space<vmem>>, vector<16x32xbf16>
    %c16 = arith.constant 16 : index
    %c0_12 = arith.constant 0 : index
    %14 = vector.load %arg11[%c16, %c0_12] : memref<64x32xbf16, #tpu.memory_space<vmem>>, vector<16x32xbf16>
    tpu.vector_store %arg11[%c16, %c0_12], %13 {strides = array<i32>} : memref<64x32xbf16, #tpu.memory_space<vmem>>, vector<16x32xbf16>,
    %c0_13 = arith.constant 0 : index
    %c64 = arith.constant 64 : index
    %15 = vector.load %arg9[%c0_13, %c64] : memref<16x128xbf16, #tpu.memory_space<vmem>>, vector<16x32xbf16>
    %c32_14 = arith.constant 32 : index
    %c0_15 = arith.constant 0 : index
    %16 = vector.load %arg11[%c32_14, %c0_15] : memref<64x32xbf16, #tpu.memory_space<vmem>>, vector<16x32xbf16>
    tpu.vector_store %arg11[%c32_14, %c0_15], %15 {strides = array<i32>} : memref<64x32xbf16, #tpu.memory_space<vmem>>, vector<16x32xbf16>,
    %c0_16 = arith.constant 0 : index
    %c96 = arith.constant 96 : index
    %17 = vector.load %arg9[%c0_16, %c96] : memref<16x128xbf16, #tpu.memory_space<vmem>>, vector<16x32xbf16>
    %c48 = arith.constant 48 : index
    %c0_17 = arith.constant 0 : index
    %18 = vector.load %arg11[%c48, %c0_17] : memref<64x32xbf16, #tpu.memory_space<vmem>>, vector<16x32xbf16>
    tpu.vector_store %arg11[%c48, %c0_17], %17 {strides = array<i32>} : memref<64x32xbf16, #tpu.memory_space<vmem>>, vector<16x32xbf16>,
    %c0_18 = arith.constant 0 : index
    %c0_19 = arith.constant 0 : index
    %19 = vector.load %arg11[%c0_18, %c0_19] : memref<64x32xbf16, #tpu.memory_space<vmem>>, vector<64x32xbf16>
    %c0_20 = arith.constant 0 : index
    %c0_21 = arith.constant 0 : index
    %20 = vector.load %arg12[%c0_20, %c0_21] : memref<64x32xbf16, #tpu.memory_space<vmem>>, vector<64x32xbf16>
    %cst_22 = arith.constant dense<0.000000e+00> : vector<64x64xf32>
    %21 = tpu.matmul %19, %20, %cst_22 {dimension_numbers = #tpu.dot_dimension_numbers<[1], [1], [0], [0], [0, 0, 1, 0], [], []>} : vector<64x32xbf16>, vector<64x32xbf16>, vector<64x64xf32> -> vector<64x64xf32>
    %c0_23 = arith.constant 0 : index
    %c0_24 = arith.constant 0 : index
    %22 = vector.load %arg3[%c0_23, %c0_24] : memref<1x64xf32, #tpu.memory_space<vmem>>, vector<1x64xf32>
    %23 = vector.broadcast %22 : vector<1x64xf32> to vector<64x64xf32>
    %24 = arith.addf %21, %23 : vector<64x64xf32>
    %cst_25 = arith.constant dense<0xFF800000> : vector<64xf32>
    %25 = vector.multi_reduction <maximumf>, %24, %cst_25 [1] : vector<64x64xf32> to vector<64xf32>
    %26 = vector.shape_cast %25 : vector<64xf32> to vector<64x1xf32>
    %27 = vector.broadcast %26 : vector<64x1xf32> to vector<64x64xf32>
    %28 = arith.subf %24, %27 : vector<64x64xf32>
    %29 = math.exp %28 : vector<64x64xf32>
    %cst_26 = arith.constant dense<0.000000e+00> : vector<64xf32>
    %30 = vector.multi_reduction <add>, %29, %cst_26 [1] : vector<64x64xf32> to vector<64xf32>
    %31 = vector.shape_cast %30 : vector<64xf32> to vector<64x1xf32>
    %32 = tpu.reciprocal %31 {approx = true} : vector<64x1xf32> -> vector<64x1xf32>
    %33 = vector.broadcast %32 : vector<64x1xf32> to vector<64x64xf32>
    %34 = arith.mulf %29, %33 : vector<64x64xf32>
    %35 = arith.truncf %34 : vector<64x64xf32> to vector<64x64xbf16>
    %c0_27 = arith.constant 0 : index
    %c0_28 = arith.constant 0 : index
    %36 = vector.load %arg13[%c0_27, %c0_28] : memref<64x32xbf16, #tpu.memory_space<vmem>>, vector<64x32xbf16>
    %cst_29 = arith.constant dense<0.000000e+00> : vector<64x32xf32>
    %37 = tpu.matmul %35, %36, %cst_29 {dimension_numbers = #tpu.dot_dimension_numbers<[1], [0], [0], [1], [0, 0, 1, 1], [], []>} : vector<64x64xbf16>, vector<64x32xbf16>, vector<64x32xf32> -> vector<64x32xf32>
    %38 = vector.extract_strided_slice %37 {offsets = [0, 0], sizes = [16, 32], strides = [1, 1]} : vector<64x32xf32> to vector<16x32xf32>
    %39 = arith.truncf %38 : vector<16x32xf32> to vector<16x32xbf16>
    %c0_30 = arith.constant 0 : index
    %c0_31 = arith.constant 0 : index
    %40 = vector.load %arg14[%c0_30, %c0_31] : memref<16x128xbf16, #tpu.memory_space<vmem>>, vector<16x32xbf16>
    tpu.vector_store %arg14[%c0_30, %c0_31], %39 {strides = array<i32>} : memref<16x128xbf16, #tpu.memory_space<vmem>>, vector<16x32xbf16>,
    %41 = vector.extract_strided_slice %37 {offsets = [16, 0], sizes = [16, 32], strides = [1, 1]} : vector<64x32xf32> to vector<16x32xf32>
    %42 = arith.truncf %41 : vector<16x32xf32> to vector<16x32xbf16>
    %c0_32 = arith.constant 0 : index
    %c32_33 = arith.constant 32 : index
    %43 = vector.load %arg14[%c0_32, %c32_33] : memref<16x128xbf16, #tpu.memory_space<vmem>>, vector<16x32xbf16>
    tpu.vector_store %arg14[%c0_32, %c32_33], %42 {strides = array<i32>} : memref<16x128xbf16, #tpu.memory_space<vmem>>, vector<16x32xbf16>,
    %44 = vector.extract_strided_slice %37 {offsets = [32, 0], sizes = [16, 32], strides = [1, 1]} : vector<64x32xf32> to vector<16x32xf32>
    %45 = arith.truncf %44 : vector<16x32xf32> to vector<16x32xbf16>
    %c0_34 = arith.constant 0 : index
    %c64_35 = arith.constant 64 : index
    %46 = vector.load %arg14[%c0_34, %c64_35] : memref<16x128xbf16, #tpu.memory_space<vmem>>, vector<16x32xbf16>
    tpu.vector_store %arg14[%c0_34, %c64_35], %45 {strides = array<i32>} : memref<16x128xbf16, #tpu.memory_space<vmem>>, vector<16x32xbf16>,
    %47 = vector.extract_strided_slice %37 {offsets = [48, 0], sizes = [16, 32], strides = [1, 1]} : vector<64x32xf32> to vector<16x32xf32>
    %48 = arith.truncf %47 : vector<16x32xf32> to vector<16x32xbf16>
    %c0_36 = arith.constant 0 : index
    %c96_37 = arith.constant 96 : index
    %49 = vector.load %arg14[%c0_36, %c96_37] : memref<16x128xbf16, #tpu.memory_space<vmem>>, vector<16x32xbf16>
    tpu.vector_store %arg14[%c0_36, %c96_37], %48 {strides = array<i32>} : memref<16x128xbf16, #tpu.memory_space<vmem>>, vector<16x32xbf16>,
    %c0_38 = arith.constant 0 : index
    %c0_39 = arith.constant 0 : index
    %50 = vector.load %arg14[%c0_38, %c0_39] : memref<16x128xbf16, #tpu.memory_space<vmem>>, vector<16x128xbf16>
    %c0_40 = arith.constant 0 : index
    %c0_41 = arith.constant 0 : index
    %51 = vector.load %arg6[%c0_40, %c0_41] : memref<128x128xbf16, #tpu.memory_space<vmem>>, vector<128x128xbf16>
    %cst_42 = arith.constant dense<0.000000e+00> : vector<16x128xf32>
    %52 = tpu.matmul %50, %51, %cst_42 {dimension_numbers = #tpu.dot_dimension_numbers<[1], [0], [0], [1], [0, 0, 1, 1], [], []>} : vector<16x128xbf16>, vector<128x128xbf16>, vector<16x128xf32> -> vector<16x128xf32>
    %c0_43 = arith.constant 0 : index
    %c0_44 = arith.constant 0 : index
    %53 = vector.load %arg7[%c0_43, %c0_44] : memref<1x128xf32, #tpu.memory_space<vmem>>, vector<1x128xf32>
    %54 = vector.broadcast %53 : vector<1x128xf32> to vector<16x128xf32>
    %55 = arith.addf %52, %54 : vector<16x128xf32>
    %c0_45 = arith.constant 0 : index
    %c0_46 = arith.constant 0 : index
    %56 = vector.load %arg8[%c0_45, %c0_46] : memref<16x128xf32, #tpu.memory_space<vmem>>, vector<16x128xf32>
    tpu.vector_store %arg8[%c0_45, %c0_46], %55 {strides = array<i32>} : memref<16x128xf32, #tpu.memory_space<vmem>>, vector<16x128xf32>,
    return
  }
  func.func @transform_0(%arg0: i32) -> (i32, i32) {
    %c0_i32 = arith.constant 0 : i32
    %c0_i32_0 = arith.constant 0 : i32
    return %arg0, %c0_i32 : i32, i32
  }
  func.func @transform_1(%arg0: i32) -> (i32, i32) {
    %c0_i32 = arith.constant 0 : i32
    %c0_i32_0 = arith.constant 0 : i32
    %c0_i32_1 = arith.constant 0 : i32
    return %c0_i32, %c0_i32_0 : i32, i32
  }
  func.func @transform_2(%arg0: i32) -> (i32, i32) {
    %c0_i32 = arith.constant 0 : i32
    %c0_i32_0 = arith.constant 0 : i32
    %c0_i32_1 = arith.constant 0 : i32
    return %c0_i32, %c0_i32_0 : i32, i32
  }
  func.func @transform_3(%arg0: i32) -> (i32, i32) {
    %c0_i32 = arith.constant 0 : i32
    %c0_i32_0 = arith.constant 0 : i32
    %c0_i32_1 = arith.constant 0 : i32
    return %c0_i32, %c0_i32_0 : i32, i32
  }
  func.func @transform_4(%arg0: i32) -> (i32, i32) {
    %c0_i32 = arith.constant 0 : i32
    %c0_i32_0 = arith.constant 0 : i32
    %c0_i32_1 = arith.constant 0 : i32
    return %c0_i32, %c0_i32_0 : i32, i32
  }
  func.func @transform_5(%arg0: i32) -> (i32, i32) {
    %c0_i32 = arith.constant 0 : i32
    %c0_i32_0 = arith.constant 0 : i32
    %c0_i32_1 = arith.constant 0 : i32
    return %c0_i32, %c0_i32_0 : i32, i32
  }
  func.func @transform_6(%arg0: i32) -> (i32, i32) {
    %c0_i32 = arith.constant 0 : i32
    %c0_i32_0 = arith.constant 0 : i32
    %c0_i32_1 = arith.constant 0 : i32
    return %c0_i32, %c0_i32_0 : i32, i32
  }
  func.func @transform_7(%arg0: i32) -> (i32, i32) {
    %c0_i32 = arith.constant 0 : i32
    %c0_i32_0 = arith.constant 0 : i32
    return %arg0, %c0_i32 : i32, i32
  }
}

</mosaic_0001>

<bundles_post_ra>
// kernel: tpu_custom_call.1
= control target key start
LH: loop header
LB: loop body
LE: loop exit
PB: predicated region body
PF: predicated region fallthrough
CT: control target
= control target key end

     0   :  { %12 = vsyncpa [#allocation9], 0  ;;  %s1488_s0 = inlined_call_operand.hbm [shape: f32[16,128], index: 0, kind: input, shape index: {}]   ;;  %s1489_s1 = inlined_call_operand.hbm [shape: f32[16,128], index: 1, kind: input, shape index: {}]   ;;  %s1490_s2 = inlined_call_operand.vmem [shape: f32[1,64], index: 2, kind: input, shape index: {}]   ;;  %s1491_s3 = inlined_call_operand.hbm [shape: bf16[128,128], index: 3, kind: input, shape index: {}]   ;;  %s1492_s4 = inlined_call_operand.hbm [shape: bf16[128,256], index: 4, kind: input, shape index: {}]   ;;  %s1493_s5 = inlined_call_operand.hbm [shape: bf16[128,128], index: 5, kind: input, shape index: {}]   ;;  %s1494_s6 = inlined_call_operand.vmem [shape: f32[1,128], index: 6, kind: input, shape index: {}]   ;;  %s1495_s7 = inlined_call_operand.hbm [shape: f32[16,128], index: 7, kind: output, shape index: {}]  }
   0x1   :  { %13 = vsyncpa [#allocation12], 0 }
   0x2   :  { %14 = vsyncpa [#allocation15], 0 }
   0x3   :  { %15 = vsyncpa [#allocation10], 0  ;;  %s1234_s24 = smov [#allocation11]   ;;  %s1235_s26 = smov [#allocation14]  }
   0x4   :  { %s33_s25 = sshll.u32 %s1234_s24, 4  ;;  %s59_s27 = sshll.u32 %s1235_s26, 4  ;;  %s34_s25 = int_to_ptr.vmem [resolvable:$true] %s33_s25  ;;  %s1289_s27 = int_to_ptr.vmem [resolvable:$true] %s59_s27 }
   0x5   :  { %s1094_s30 = scalar_lea.hbm %s1489_s1, 256 }
   0x6   :  { %p1095_p0 = scmp.ne.s32.totalorder %s1489_s1, %s1094_s30  ;;  %p1098_p1 = scmp.lt.u32.totalorder %s1094_s30, %s1489_s1 }
   0x8   :  { %p1100_p2 = pnand %p1098_p1, %p1095_p0 }
   0xa   :  { %1103 = shalt.err (!%p1100_p2)
}
   0xb   :  { %s1104_s12 = scalar_lea.vmem %s34_s25, 256  ;;  %p1109_p4 = scmp.lt.s32.totalorder %s34_s25, %s34_s25 }
   0xc   :  { %p1105_p3 = scmp.ne.s32.totalorder %s34_s25, %s1104_s12  ;;  %p1110_p5 = scmp.lt.s32.totalorder %s1104_s12, %s1104_s12 }
   0xe   :  { %p1111_p6 = por %p1110_p5, %p1109_p4 }
  0x10   :  { %p1112_p7 = pnand %p1111_p6, %p1105_p3 }
  0x12   :  { %1115 = shalt.err (!%p1112_p7)
}
  0x13   :  { %s1236_s13 = smov 128   ;;  %s1237_s14 = smov 8  }
  0x14   :  { %39 = dma.hbm_to_vmem [thread:$0]  %s1489_s1, 256, %s34_s25, [#allocation12], %s1236_s13, %s1236_s13, %s1237_s14  }
  0x15   :  { %s1116_s19 = scalar_lea.hbm %s1492_s4, 2048 }
  0x16   :  { %p1117_p8 = scmp.ne.s32.totalorder %s1492_s4, %s1116_s19  ;;  %p1120_p9 = scmp.lt.u32.totalorder %s1116_s19, %s1492_s4 }
  0x18   :  { %p1122_p10 = pnand %p1120_p9, %p1117_p8 }
  0x1a   :  { %1125 = shalt.err (!%p1122_p10)
}
  0x1b   :  { %s1126_s24 = scalar_lea.vmem %s1289_s27, 2048  ;;  %p1131_p12 = scmp.lt.s32.totalorder %s1289_s27, %s1289_s27 }
  0x1c   :  { %p1127_p11 = scmp.ne.s32.totalorder %s1289_s27, %s1126_s24  ;;  %p1132_p13 = scmp.lt.s32.totalorder %s1126_s24, %s1126_s24 }
  0x1e   :  { %p1133_p0 = por %p1132_p13, %p1131_p12 }
  0x20   :  { %p1134_p1 = pnand %p1133_p0, %p1127_p11 }
  0x22   :  { %1137 = shalt.err (!%p1134_p1)
}
  0x23   :  { %65 = dma.hbm_to_vmem [thread:$0]  %s1492_s4, 2048, %s1289_s27, [#allocation15], %s1236_s13, %s1236_s13, %s1237_s14  }
  0x24   :  { %s1238_s26 = smov [#allocation8]   ;;  %s1239_s29 = smov [#allocation13]  }
  0x25   :  { %s21_s28 = sshll.u32 %s1238_s26, 4  ;;  %s47_s30 = sshll.u32 %s1239_s29, 4  ;;  %s22_s28 = int_to_ptr.vmem [resolvable:$true] %s21_s28  ;;  %s1326_s30 = int_to_ptr.vmem [resolvable:$true] %s47_s30 }
  0x26   :  { %s1138_s10 = scalar_lea.hbm %s1488_s0, 256 }
  0x27   :  { %p1139_p2 = scmp.ne.s32.totalorder %s1488_s0, %s1138_s10  ;;  %p1142_p3 = scmp.lt.u32.totalorder %s1138_s10, %s1488_s0 }
  0x29   :  { %p1144_p4 = pnand %p1142_p3, %p1139_p2 }
  0x2b   :  { %1147 = shalt.err (!%p1144_p4)
}
  0x2c   :  { %s1148_s4 = scalar_lea.vmem %s22_s28, 256  ;;  %p1153_p6 = scmp.lt.s32.totalorder %s22_s28, %s22_s28 }
  0x2d   :  { %p1149_p5 = scmp.ne.s32.totalorder %s22_s28, %s1148_s4  ;;  %p1154_p7 = scmp.lt.s32.totalorder %s1148_s4, %s1148_s4 }
  0x2f   :  { %p1155_p8 = por %p1154_p7, %p1153_p6 }
  0x31   :  { %p1156_p9 = pnand %p1155_p8, %p1149_p5 }
  0x33   :  { %1159 = shalt.err (!%p1156_p9)
}
  0x34   :  { %27 = dma.hbm_to_vmem [thread:$0]  %s1488_s0, 256, %s22_s28, [#allocation9], %s1236_s13, %s1236_s13, %s1237_s14  }
  0x35   :  { %s1160_s20 = scalar_lea.hbm %s1491_s3, 1024 }
  0x36   :  { %p1161_p10 = scmp.ne.s32.totalorder %s1491_s3, %s1160_s20  ;;  %p1164_p11 = scmp.lt.u32.totalorder %s1160_s20, %s1491_s3 }
  0x38   :  { %p1166_p12 = pnand %p1164_p11, %p1161_p10 }
  0x3a   :  { %1169 = shalt.err (!%p1166_p12)
}
  0x3b   :  { %s1170_s1 = scalar_lea.vmem %s1326_s30, 1024  ;;  %p1175_p0 = scmp.lt.s32.totalorder %s1326_s30, %s1326_s30 }
  0x3c   :  { %p1171_p13 = scmp.ne.s32.totalorder %s1326_s30, %s1170_s1  ;;  %p1176_p1 = scmp.lt.s32.totalorder %s1170_s1, %s1170_s1 }
  0x3e   :  { %p1177_p2 = por %p1176_p1, %p1175_p0 }
  0x40   :  { %p1178_p3 = pnand %p1177_p2, %p1171_p13 }
  0x42   :  { %1181 = shalt.err (!%p1178_p3)
}
  0x43   :  { %s1240_s0 = smov 64   ;;  %s1241_s25 = smov 4  }
  0x44   :  { %53 = dma.hbm_to_vmem [thread:$0]  %s1491_s3, 1024, %s1326_s30, [#allocation12], %s1240_s0, %s1240_s0, %s1241_s25  }
  0x45   :  { %s1242_s29 = smov [#allocation16]   ;;  %s1182_s11 = scalar_lea.hbm %s1493_s5, 1024 }
  0x46   :  { %s71_s8 = sshll.u32 %s1242_s29, 4  ;;  %p1183_p4 = scmp.ne.s32.totalorder %s1493_s5, %s1182_s11  ;;  %s72_s8 = int_to_ptr.vmem [resolvable:$true] %s71_s8 }
  0x47   :  { %p1186_p5 = scmp.lt.u32.totalorder %s1182_s11, %s1493_s5 }
  0x49   :  { %p1188_p6 = pnand %p1186_p5, %p1183_p4 }
  0x4b   :  { %1191 = shalt.err (!%p1188_p6)
}
  0x4c   :  { %s1192_s27 = scalar_lea.vmem %s72_s8, 1024  ;;  %p1197_p8 = scmp.lt.s32.totalorder %s72_s8, %s72_s8 }
  0x4d   :  { %p1193_p7 = scmp.ne.s32.totalorder %s72_s8, %s1192_s27  ;;  %p1198_p9 = scmp.lt.s32.totalorder %s1192_s27, %s1192_s27 }
  0x4f   :  { %p1199_p10 = por %p1198_p9, %p1197_p8 }
  0x51   :  { %p1200_p11 = pnand %p1199_p10, %p1193_p7 }
  0x53   :  { %1203 = shalt.err (!%p1200_p11)
}
  0x54   :  { %77 = dma.hbm_to_vmem [thread:$0]  %s1493_s5, 1024, %s72_s8, [#allocation15], %s1240_s0, %s1240_s0, %s1241_s25  }
  0x55   :  { %1226 = dma.done.wait [#allocation9], 256  }
  0x56   :  { %1227 = vsyncadd [#allocation9], 4294967040 }
  0x57   :  { %1228 = dma.done.wait [#allocation12], 1280  }
  0x58   :  { %1229 = vsyncadd [#allocation12], 4294966016 }
  0x59   :  { %1230 = dma.done.wait [#allocation15], 3072  }
  0x5a   :  { %1231 = vsyncadd [#allocation15], 4294964224  ;;  %v1243_v0 = vmov 0.0   ;;  %v1244_v1 = vmov 0   ;;  %vm1245_vm0 = vmmov 0   ;;  %v1037_v8 = vld [vmem:[#allocation13] sm:$0xff]  }
  0x5b   :  { %931 = vmatprep.subr.bf16.mxu1 %v1243_v0  ;;  %231 = vmatprep.mubr.bf16.mxu0 %v1244_v1  ;;  %v1022_v2 = vld [vmem:[#allocation14 + $0x4] ss:$8 sps:$4 sm:$0xff]   ;;  %v1024_v3 = vld [vmem:[#allocation14] ss:$8 sps:$4 sm:$0xff]   ;;  %v1025_v4 = vld [vmem:[#allocation14 + $0x14] ss:$8 sps:$4 sm:$0xff]  }
  0x5c   :  { %947 = vmatprep.mubr.msk.bf16.mxu1 %vm1245_vm0, %v1243_v0  ;;  %199 = vmatprep.subr.bf16.mxu0 %v1022_v2  ;;  %v1027_v5 = vld [vmem:[#allocation14 + $0x10] ss:$8 sps:$4 sm:$0xff]   ;;  %v1028_v6 = vld [vmem:[#allocation14 + $0x24] ss:$8 sps:$4 sm:$0xff]   ;;  %v1030_v7 = vld [vmem:[#allocation14 + $0x20] ss:$8 sps:$4 sm:$0xff]  }
  0x5d   :  { %200 = vmatpush1.bf16.msra.mxu0 %v1024_v3  ;;  %v1031_v9 = vld [vmem:[#allocation14 + $0x34] ss:$8 sps:$4 sm:$0xff]   ;;  %932 = vmatpush3.bf16.msra.mxu1 %v1037_v8  ;;  %v1041_v10 = vld [vmem:[#allocation13 + $0x8] sm:$0xff]   ;;  %v1033_v11 = vld [vmem:[#allocation14 + $0x30] ss:$8 sps:$4 sm:$0xff]   ;;  %vm247_vm1 = vcmask 261120  }
  0x5e   :  { %201 = vmatprep.subr.bf16.mxu0 %v1025_v4  ;;  %933 = vmatprep.subr.bf16.mxu1 %v1243_v0  ;;  %v1034_v12 = vld [vmem:[#allocation14 + $0x44] ss:$8 sps:$4 sm:$0xff]   ;;  %v1045_v13 = vld [vmem:[#allocation13 + $0x10] sm:$0xff]   ;;  %v1036_v14 = vld [vmem:[#allocation14 + $0x40] ss:$8 sps:$4 sm:$0xff]   ;;  %s1246_s5 = smov 32  }
  0x5f   :  { %v1038_v15 = vld [vmem:[#allocation14 + $0x54] ss:$8 sps:$4 sm:$0xff]   ;;  %v1040_v17 = vld [vmem:[#allocation14 + $0x50] ss:$8 sps:$4 sm:$0xff]   ;;  %v1042_v18 = vld [vmem:[#allocation14 + $0x64] ss:$8 sps:$4 sm:$0xff]  }
  0x60   :  { %v1049_v16 = vld [vmem:[#allocation13 + $0x18] sm:$0xff]   ;;  %v1050_v19 = vld [vmem:[#allocation13 + $0x20] sm:$0xff]   ;;  %v1051_v22 = vld [vmem:[#allocation13 + $0x28] sm:$0xff]   ;;  %s1247_s17 = smov 96   ;;  %vm524_vm2 = vcmask 523264   ;;  %vm705_vm3 = vcmask 523520  }
  0x61   :  { %202 = vmatpush1.bf16.msra.mxu0 %v1027_v5  ;;  %934 = vmatpush3.bf16.msra.mxu1 %v1041_v10  ;;  %v1044_v20 = vld [vmem:[#allocation14 + $0x60] ss:$8 sps:$4 sm:$0xff]   ;;  %v1046_v21 = vld [vmem:[#allocation14 + $0x74] ss:$8 sps:$4 sm:$0xff]   ;;  %v1048_v23 = vld [vmem:[#allocation14 + $0x70] ss:$8 sps:$4 sm:$0xff]  }
  0x62   :  { %203 = vmatprep.subr.bf16.mxu0 %v1028_v6  ;;  %935 = vmatprep.subr.bf16.mxu1 %v1243_v0  ;;  %v100_v24 = vld [vmem:[#allocation11] sm:$0xff]  ;;  %v101_v25 = vld [vmem:[#allocation11 + $0x8] sm:$0xff]  ;;  %v287_v29 = vld [vmem:[#allocation8] sm:$0xff]  ;;  %vm712_vm4 = vcmask 785920   ;;  %vm719_vm5 = vcmask 1048320   ;;  %s1248_s21 = smov [#allocation17]  }
  0x63   :  { %v1052_v26 = vld [vmem:[#allocation13 + $0x30] sm:$0xff]   ;;  %v102_v27 = vpack.c.bf16 %v101_v25, %v100_v24  ;;  %v1053_v28 = vld [vmem:[#allocation13 + $0x38] sm:$0xff]   ;;  %v288_v30 = vld [vmem:[#allocation8 + $0x8] sm:$0xff]  ;;  %s841_s22 = sshll.u32 %s1248_s21, 4  ;;  %s842_s22 = int_to_ptr.vmem [resolvable:$true] %s841_s22 }
  0x64   :  { %v289_v31 = vpack.c.bf16 %v288_v30, %v287_v29  ;;  %v879_v1 = vld [vmem:[%s1490_s2] ss:$0 sm:$0xff]  ;;  %s1204_s23 = scalar_lea.vmem %s842_s22, 256  ;;  %p1209_p13 = scmp.lt.s32.totalorder %s842_s22, %s842_s22 }
  0x65   :  { %204 = vmatpush1.bf16.msra.mxu0 %v1030_v7  ;;  %936 = vmatpush3.bf16.msra.mxu1 %v1045_v13  ;;  %p1205_p12 = scmp.ne.s32.totalorder %s842_s22, %s1204_s23  ;;  %p1210_p0 = scmp.lt.s32.totalorder %s1204_s23, %s1204_s23 }
  0x66   :  { %205 = vmatprep.subr.bf16.mxu0 %v1031_v9  ;;  %937 = vmatprep.subr.bf16.mxu1 %v1243_v0 }
  0x67   :  { %p1211_p1 = por %p1210_p0, %p1209_p13 }
  0x69   :  { %206 = vmatpush1.bf16.msra.mxu0 %v1033_v11  ;;  %938 = vmatpush3.bf16.msra.mxu1 %v1049_v16  ;;  %p1212_p2 = pnand %p1211_p1, %p1205_p12 }
  0x6a   :  { %207 = vmatprep.subr.bf16.mxu0 %v1034_v12  ;;  %939 = vmatprep.subr.bf16.mxu1 %v1243_v0 }
  0x6d   :  { %208 = vmatpush1.bf16.msra.mxu0 %v1036_v14  ;;  %940 = vmatpush3.bf16.msra.mxu1 %v1050_v19 }
  0x6e   :  { %209 = vmatprep.subr.bf16.mxu0 %v1038_v15  ;;  %941 = vmatprep.subr.bf16.mxu1 %v1243_v0 }
  0x71   :  { %210 = vmatpush1.bf16.msra.mxu0 %v1040_v17  ;;  %942 = vmatpush3.bf16.msra.mxu1 %v1051_v22 }
  0x72   :  { %211 = vmatprep.subr.bf16.mxu0 %v1042_v18  ;;  %943 = vmatprep.subr.bf16.mxu1 %v1243_v0 }
  0x75   :  { %212 = vmatpush1.bf16.msra.mxu0 %v1044_v20  ;;  %944 = vmatpush3.bf16.msra.mxu1 %v1052_v26 }
  0x76   :  { %213 = vmatprep.subr.bf16.mxu0 %v1046_v21  ;;  %945 = vmatprep.subr.bf16.mxu1 %v1243_v0 }
  0x79   :  { %214 = vmatpush1.bf16.msra.mxu0 %v1048_v23  ;;  %946 = vmatpush3.bf16.msra.mxu1 %v1053_v28 }
  0x7c   :  { %232 = vmatmul.mubr.bf16.vlgmr.msra.gmra.mrb[0].mxu0 %v102_v27  ;;  %948 = vmatmul.mubr.bf16.vlgmr.msra.gmra.mrb[0].mxu1 %v289_v31 }
 0x14f   :  { %v233_v32 = vpop.f32.mrb[0].mxu0  ;;  %v388_v38 = vpop.f32.mrb[0].mxu1 }
 0x150   :  { %v235_v33 = vpop.f32.mrb[1].mxu0  ;;  %v395_v39 = vmul.f32 0.17677669, %v388_v38  ;;  %v949_v40 = vpop.f32.mrb[1].mxu1 }
 0x151   :  { %v237_v34 = vpop.f32.mrb[2].mxu0  ;;  %v391_v41 = vpop.f32.mrb[2].mxu1 }
 0x152   :  { %v242_v35 = vpack.c.bf16 %v237_v34, %v233_v32  ;;  %v239_v36 = vpop.f32.mrb[3].mxu0  ;;  %v396_v42 = vmul.f32 0.17677669, %v391_v41  ;;  %v950_v43 = vpop.f32.mrb[3].mxu1 }
 0x153   :  { %v1386_v37 = vpack.c.bf16 %v239_v36, %v235_v33 }
 0x154   :  { %248 = vst.msk [vmem:[#allocation5] sm:$0xff] %vm247_vm1, %v242_v35  ;;  %277 = vrot.lane.b32.xlu1 %v242_v35, %s1246_s5  ;;  %253 = vrot.lane.b32.xlu0 %v242_v35, %s1247_s17  ;;  %v397_v44 = vpack.c.bf16 %v396_v42, %v395_v39 }
 0x155   :  { %250 = vst.msk [vmem:[#allocation6] sm:$0xff] %vm247_vm1, %v1386_v37 }
 0x156   :  { %401 = vst.msk [vmem:[#allocation4] sm:$0xff] %vm247_vm1, %v397_v44 }
 0x158   :  { %265 = vrot.lane.b32.xlu0 %v242_v35, %s1240_s0  ;;  %404 = vrot.lane.b32.xlu1 %v397_v44, %s1247_s17 }
 0x15b   :  { %v424_v45 = vld [vmem:[#allocation5] sm:$0xff] }
 0x15c   :  { %1003 = vmatprep.subr.msk.bf16.mxu0 %vm247_vm1, %v424_v45  ;;  %v448_v46 = vsel %vm247_vm1, %v424_v45, 0  ;;  %v617_v47 = vld [vmem:[#allocation6] sm:$0xff]  ;;  %410 = vrot.lane.b32.xlu0 %v397_v44, %s1240_s0 }
 0x15d   :  { %952 = vmatpush3.bf16.xpose.msra.mxu0 %v448_v46  ;;  %967 = vmatprep.subr.bf16.mxu1 %v617_v47  ;;  %v420_v48 = vld [vmem:[#allocation4] sm:$0xff] }
 0x15e   :  { %968 = vmatpush3.bf16.msra.mxu1 %v617_v47  ;;  %416 = vrot.lane.b32.xlu1 %v397_v44, %s1246_s5 }
 0x15f   :  { %959 = vmatprep.mubr.msk.bf16.mxu0 %vm247_vm1, %v420_v48 }
 0x1c6   :  { %v278_v49 = vpop.permute.xlu1 %277  ;;  %v254_v50 = vpop.permute.xlu0 %253 }
 0x1c7   :  { %280 = vst.msk [vmem:[#allocation5 + $0x18] sm:$0xff] %vm247_vm1, %v278_v49  ;;  %256 = vst.msk [vmem:[#allocation5 + $0x8] sm:$0xff] %vm247_vm1, %v254_v50 }
 0x1ca   :  { %v266_v51 = vpop.permute.xlu0 %265  ;;  %v405_v53 = vpop.permute.xlu1 %404 }
 0x1cb   :  { %268 = vst.msk [vmem:[#allocation5 + $0x10] sm:$0xff] %vm247_vm1, %v266_v51  ;;  %407 = vst.msk [vmem:[#allocation4 + $0x8] sm:$0xff] %vm247_vm1, %v405_v53 }
 0x1ce   :  { %v425_v52 = vld [vmem:[#allocation5 + $0x8] sm:$0xff]  ;;  %v411_v55 = vpop.permute.xlu0 %410  ;;  %v427_v59 = vld [vmem:[#allocation5 + $0x18] sm:$0xff] }
 0x1cf   :  { %1004 = vmatprep.subr.msk.bf16.mxu0 %vm247_vm1, %v425_v52  ;;  %v451_v54 = vsel %vm247_vm1, %v425_v52, 0  ;;  %413 = vst.msk [vmem:[#allocation4 + $0x10] sm:$0xff] %vm247_vm1, %v411_v55  ;;  %v457_v60 = vsel %vm247_vm1, %v427_v59, 0 }
 0x1d0   :  { %954 = vmatpush3.bf16.xpose.msra.mxu0 %v451_v54  ;;  %v417_v57 = vpop.permute.xlu1 %416 }
 0x1d1   :  { %419 = vst.msk [vmem:[#allocation4 + $0x18] sm:$0xff] %vm247_vm1, %v417_v57 }
 0x1d2   :  { %v426_v56 = vld [vmem:[#allocation5 + $0x10] sm:$0xff]  ;;  %v421_v61 = vld [vmem:[#allocation4 + $0x8] sm:$0xff] }
 0x1d3   :  { %1005 = vmatprep.subr.msk.bf16.mxu0 %vm247_vm1, %v426_v56  ;;  %v454_v58 = vsel %vm247_vm1, %v426_v56, 0 }
 0x1d6   :  { %v422_v62 = vld [vmem:[#allocation4 + $0x10] sm:$0xff] }
 0x1d8   :  { %956 = vmatpush3.bf16.xpose.msra.mxu0 %v454_v58  ;;  %v423_v63 = vld [vmem:[#allocation4 + $0x18] sm:$0xff] }
 0x1d9   :  { %1006 = vmatprep.subr.msk.bf16.mxu0 %vm247_vm1, %v427_v59 }
 0x1e0   :  { %958 = vmatpush3.bf16.xpose.msra.mxu0 %v457_v60 }
 0x1e7   :  { %960 = vmatmul.mubr.msk.bf16.vlgmr.msra.gmra.mrb[4].mxu0 %vm247_vm1, %v421_v61 }
 0x1e8   :  { %963 = vmatprep.mubr.msk.bf16.mxu0 %vm247_vm1, %v422_v62 }
 0x1ef   :  { %964 = vmatmul.mubr.msk.bf16.gmra.mrb[8].mxu0 %vm247_vm1, %v423_v63 }
 0x2ba   :  { %v961_v2 = vpop.f32.mrb[4].mxu0 }
 0x2bb   :  { %v502_v3 = vadd.f32 %v961_v2, %v879_v1  ;;  %v493_v4 = vpop.f32.mrb[5].mxu0 }
 0x2bc   :  { %v962_v5 = vpop.f32.mrb[6].mxu0  ;;  %v494_v6 = vadd.f32 %v879_v1, %v493_v4 }
 0x2bd   :  { %v496_v7 = vpop.f32.mrb[7].mxu0  ;;  %v531_v8 = vsel %vm524_vm2, %v502_v3, -inf  ;;  %v505_v11 = vadd.f32 %v962_v5, %v879_v1 }
 0x2be   :  { %v497_v9 = vadd.f32 %v879_v1, %v496_v7  ;;  %532 = vmax.xlane.f32.xlu0 %v531_v8  ;;  %v525_v12 = vsel %vm524_vm2, %v494_v6, -inf }
 0x2bf   :  { %v534_v20 = vsel %vm524_vm2, %v505_v11, -inf }
 0x2c0   :  { %v528_v10 = vsel %vm524_vm2, %v497_v9, -inf }
 0x2c1   :  { %529 = vmax.xlane.f32.xlu1 %v528_v10 }
 0x2c2   :  { %v965_v13 = vpop.f32.mrb[8].mxu0  ;;  %526 = vmax.xlane.f32.xlu0 %v525_v12 }
 0x2c3   :  { %v518_v14 = vadd.f32 %v965_v13, %v879_v1  ;;  %v509_v15 = vpop.f32.mrb[9].mxu0 }
 0x2c4   :  { %v966_v16 = vpop.f32.mrb[10].mxu0  ;;  %v510_v17 = vadd.f32 %v879_v1, %v509_v15 }
 0x2c5   :  { %v512_v18 = vpop.f32.mrb[11].mxu0  ;;  %v543_v19 = vsel %vm524_vm2, %v518_v14, -inf  ;;  %v521_v23 = vadd.f32 %v966_v16, %v879_v1 }
 0x2c6   :  { %v513_v21 = vadd.f32 %v879_v1, %v512_v18  ;;  %544 = vmax.xlane.f32.xlu1 %v543_v19  ;;  %535 = vmax.xlane.f32.xlu0 %v534_v20  ;;  %v537_v24 = vsel %vm524_vm2, %v510_v17, -inf }
 0x2c7   :  { %v546_v25 = vsel %vm524_vm2, %v521_v23, -inf }
 0x2c8   :  { %v540_v22 = vsel %vm524_vm2, %v513_v21, -inf }
 0x2ca   :  { %538 = vmax.xlane.f32.xlu1 %v537_v24  ;;  %541 = vmax.xlane.f32.xlu0 %v540_v22 }
 0x2ce   :  { %547 = vmax.xlane.f32.xlu0 %v546_v25 }
 0x2db   :  { %259 = vrot.lane.b32.xlu1 %v1386_v37, %s1247_s17 }
 0x34b   :  { %v533_v26 = vpop.xlane.xlu0 %532 }
 0x34c   :  { %v551_v27 = vsub.f32 %v502_v3, %v533_v26 }
 0x34e   :  { %v561_v28 = vmul.f32 1.442695, %v551_v27  ;;  %v530_v29 = vpop.xlane.xlu1 %529 }
 0x34f   :  { %v527_v30 = vpop.xlane.xlu0 %526  ;;  %v550_v33 = vsub.f32 %v497_v9, %v530_v29 }
 0x350   :  { %1062 = vpow2.f32 %v561_v28  ;;  %v549_v31 = vsub.f32 %v494_v6, %v527_v30 }
 0x351   :  { %v559_v41 = vmul.f32 1.442695, %v550_v33 }
 0x352   :  { %v557_v32 = vmul.f32 1.442695, %v549_v31 }
 0x353   :  { %v545_v34 = vpop.xlane.xlu1 %544  ;;  %v536_v35 = vpop.xlane.xlu0 %535 }
 0x354   :  { %1064 = vpow2.f32 %v557_v32  ;;  %v555_v36 = vsub.f32 %v518_v14, %v545_v34  ;;  %v552_v38 = vsub.f32 %v505_v11, %v536_v35 }
 0x356   :  { %v569_v39 = vmul.f32 1.442695, %v555_v36  ;;  %v563_v40 = vmul.f32 1.442695, %v552_v38  ;;  %v1054_v38 = vld [vmem:[#allocation16] sm:$0xff]  }
 0x357   :  { %v539_v42 = vpop.xlane.xlu1 %538  ;;  %v542_v43 = vpop.xlane.xlu0 %541 }
 0x358   :  { %1066 = vpow2.f32 %v569_v39  ;;  %v553_v44 = vsub.f32 %v510_v17, %v539_v42  ;;  %v554_v47 = vsub.f32 %v513_v21, %v542_v43  ;;  %v1055_v39 = vld [vmem:[#allocation16 + $0x8] sm:$0xff]   ;;  %v1058_v42 = vld [vmem:[#allocation16 + $0x20] sm:$0xff]  }
 0x359   :  { %1068 = vpow2.f32 %v563_v40  ;;  %v1056_v40 = vld [vmem:[#allocation16 + $0x10] sm:$0xff]   ;;  %v1059_v43 = vld [vmem:[#allocation16 + $0x28] sm:$0xff]  }
 0x35a   :  { %v1429_v45 = vpop.eup %1062  ;;  %v565_v46 = vmul.f32 1.442695, %v553_v44  ;;  %1070 = vpow2.f32 %v559_v41  ;;  %v567_v54 = vmul.f32 1.442695, %v554_v47  ;;  %v1057_v41 = vld [vmem:[#allocation16 + $0x18] sm:$0xff]  }
 0x35b   :  { %v548_v48 = vpop.xlane.xlu0 %547  ;;  %v260_v49 = vpop.permute.xlu1 %259  ;;  %v579_v50 = vsel %vm524_vm2, %v1429_v45, 0.0 }
 0x35c   :  { %1072 = vpow2.f32 %v565_v46  ;;  %v556_v51 = vsub.f32 %v521_v23, %v548_v48  ;;  %262 = vst.msk [vmem:[#allocation6 + $0x8] sm:$0xff] %vm247_vm1, %v260_v49  ;;  %580 = vadd.xlane.f32.xlu1 %v579_v50  ;;  %v1060_v46 = vld [vmem:[#allocation16 + $0x30] sm:$0xff]   ;;  %v1061_v50 = vld [vmem:[#allocation16 + $0x38] sm:$0xff]  }
 0x35e   :  { %v1065_v52 = vpop.eup %1064  ;;  %v571_v53 = vmul.f32 1.442695, %v556_v51 }
 0x35f   :  { %v573_v55 = vsel %vm524_vm2, %v1065_v52, 0.0 }
 0x360   :  { %1074 = vpow2.f32 %v571_v53  ;;  %574 = vadd.xlane.f32.xlu1 %v573_v55 }
 0x361   :  { %1076 = vpow2.f32 %v567_v54 }
 0x362   :  { %v1435_v56 = vpop.eup %1066 }
 0x363   :  { %v1069_v57 = vpop.eup %1068  ;;  %v591_v58 = vsel %vm524_vm2, %v1435_v56, 0.0  ;;  %v618_v59 = vld [vmem:[#allocation6 + $0x8] sm:$0xff] }
 0x364   :  { %v582_v60 = vsel %vm524_vm2, %v1069_v57, 0.0  ;;  %592 = vadd.xlane.f32.xlu1 %v591_v58  ;;  %969 = vmatprep.subr.bf16.mxu1 %v618_v59  ;;  %v1071_v61 = vpop.eup %1070 }
 0x365   :  { %583 = vadd.xlane.f32.xlu0 %v582_v60  ;;  %970 = vmatpush3.bf16.msra.mxu1 %v618_v59  ;;  %v576_v1 = vsel %vm524_vm2, %v1071_v61, 0.0 }
 0x366   :  { %v1073_v62 = vpop.eup %1072 }
 0x367   :  { %v585_v63 = vsel %vm524_vm2, %v1073_v62, 0.0 }
 0x368   :  { %586 = vadd.xlane.f32.xlu1 %v585_v63 }
 0x369   :  { %577 = vadd.xlane.f32.xlu0 %v576_v1 }
 0x36a   :  { %v1075_v2 = vpop.eup %1074 }
 0x36b   :  { %v594_v3 = vsel %vm524_vm2, %v1075_v2, 0.0  ;;  %v1077_v4 = vpop.eup %1076 }
 0x36c   :  { %v588_v5 = vsel %vm524_vm2, %v1077_v4, 0.0 }
 0x36d   :  { %595 = vadd.xlane.f32.xlu0 %v594_v3 }
 0x371   :  { %589 = vadd.xlane.f32.xlu0 %v588_v5 }
 0x379   :  { %283 = vrot.lane.b32.xlu1 %v1386_v37, %s1246_s5 }
 0x387   :  { %271 = vrot.lane.b32.xlu0 %v1386_v37, %s1240_s0 }
 0x3e9   :  { %v581_v6 = vpop.xlane.xlu1 %580 }
 0x3ed   :  { %v575_v7 = vpop.xlane.xlu1 %574 }
 0x3ee   :  { %1078 = vrcp.f32 %v575_v7 }
 0x3f1   :  { %v593_v8 = vpop.xlane.xlu1 %592 }
 0x3f2   :  { %v584_v9 = vpop.xlane.xlu0 %583 }
 0x3f5   :  { %v587_v10 = vpop.xlane.xlu1 %586 }
 0x3f6   :  { %v578_v11 = vpop.xlane.xlu0 %577 }
 0x3f7   :  { %1080 = vrcp.f32 %v578_v11 }
 0x3f8   :  { %v1079_v15 = vpop.eup %1078  ;;  %1082 = vrcp.f32 %v584_v9 }
 0x3f9   :  { %v284_v12 = vpop.permute.xlu1 %283  ;;  %v605_v37 = vmul.f32 %v1079_v15, %v1065_v52 }
 0x3fa   :  { %v596_v13 = vpop.xlane.xlu0 %595  ;;  %286 = vst.msk [vmem:[#allocation6 + $0x18] sm:$0xff] %vm247_vm1, %v284_v12 }
 0x3fe   :  { %v590_v14 = vpop.xlane.xlu0 %589 }
 0x3ff   :  { %1084 = vrcp.f32 %v590_v14 }
 0x400   :  { %1086 = vrcp.f32 %v581_v6 }
 0x401   :  { %v1081_v16 = vpop.eup %1080  ;;  %1088 = vrcp.f32 %v587_v10  ;;  %v620_v24 = vld [vmem:[#allocation6 + $0x18] sm:$0xff] }
 0x402   :  { %v272_v17 = vpop.permute.xlu0 %271  ;;  %v606_v18 = vmul.f32 %v1081_v16, %v1071_v61  ;;  %1090 = vrcp.f32 %v596_v13  ;;  %v1083_v20 = vpop.eup %1082  ;;  %v888_v61 = vld [vmem:[%s1494_s6] ss:$0 sm:$0xff] }
 0x403   :  { %274 = vst.msk [vmem:[#allocation6 + $0x10] sm:$0xff] %vm247_vm1, %v272_v17  ;;  %1092 = vrcp.f32 %v593_v8  ;;  %v608_v26 = vmul.f32 %v1083_v20, %v1069_v57 }
 0x404   :  { %v613_v19 = vpack.c.bf16 %v606_v18, %v605_v37 }
 0x406   :  { %975 = vmatprep.mubr.msk.bf16.mxu1 %vm524_vm2, %v613_v19 }
 0x409   :  { %v1085_v22 = vpop.eup %1084 }
 0x40a   :  { %v619_v21 = vld [vmem:[#allocation6 + $0x10] sm:$0xff]  ;;  %v1087_v23 = vpop.eup %1086  ;;  %v610_v27 = vmul.f32 %v1085_v22, %v1077_v4 }
 0x40b   :  { %971 = vmatprep.subr.bf16.mxu1 %v619_v21  ;;  %v1089_v25 = vpop.eup %1088  ;;  %v607_v28 = vmul.f32 %v1087_v23, %v1429_v45 }
 0x40c   :  { %972 = vmatpush3.bf16.msra.mxu1 %v619_v21  ;;  %v609_v29 = vmul.f32 %v1089_v25, %v1073_v62  ;;  %v1091_v31 = vpop.eup %1090 }
 0x40d   :  { %973 = vmatprep.subr.bf16.mxu1 %v620_v24  ;;  %v614_v30 = vpack.c.bf16 %v608_v26, %v607_v28  ;;  %v1093_v33 = vpop.eup %1092  ;;  %v612_v34 = vmul.f32 %v1091_v31, %v1075_v2 }
 0x40e   :  { %v615_v32 = vpack.c.bf16 %v610_v27, %v609_v29  ;;  %v611_v35 = vmul.f32 %v1093_v33, %v1435_v56 }
 0x410   :  { %974 = vmatpush3.bf16.msra.mxu1 %v620_v24  ;;  %v616_v36 = vpack.c.bf16 %v612_v34, %v611_v35 }
 0x411   :  { %983 = vmatprep.subr.bf16.mxu1 %v1243_v0 }
 0x413   :  { %976 = vmatmul.mubr.msk.bf16.vlgmr.msra.gmra.mrb[4].mxu1 %vm524_vm2, %v614_v30 }
 0x414   :  { %979 = vmatprep.mubr.msk.bf16.mxu1 %vm524_vm2, %v615_v32  ;;  %984 = vmatpush3.bf16.msra.mxu1 %v1054_v38 }
 0x415   :  { %985 = vmatprep.subr.bf16.mxu1 %v1243_v0 }
 0x418   :  { %986 = vmatpush3.bf16.msra.mxu1 %v1055_v39 }
 0x419   :  { %987 = vmatprep.subr.bf16.mxu1 %v1243_v0 }
 0x41b   :  { %980 = vmatmul.mubr.msk.bf16.gmra.mrb[8].mxu1 %vm524_vm2, %v616_v36 }
 0x41c   :  { %999 = vmatprep.mubr.msk.bf16.mxu1 %vm1245_vm0, %v1243_v0  ;;  %988 = vmatpush3.bf16.msra.mxu1 %v1056_v40 }
 0x41d   :  { %989 = vmatprep.subr.bf16.mxu1 %v1243_v0 }
 0x420   :  { %990 = vmatpush3.bf16.msra.mxu1 %v1057_v41 }
 0x421   :  { %991 = vmatprep.subr.bf16.mxu1 %v1243_v0 }
 0x424   :  { %992 = vmatpush3.bf16.msra.mxu1 %v1058_v42 }
 0x425   :  { %993 = vmatprep.subr.bf16.mxu1 %v1243_v0 }
 0x428   :  { %994 = vmatpush3.bf16.msra.mxu1 %v1059_v43 }
 0x429   :  { %995 = vmatprep.subr.bf16.mxu1 %v1243_v0 }
 0x42c   :  { %996 = vmatpush3.bf16.msra.mxu1 %v1060_v46 }
 0x42d   :  { %997 = vmatprep.subr.bf16.mxu1 %v1243_v0 }
 0x430   :  { %998 = vmatpush3.bf16.msra.mxu1 %v1061_v50 }
 0x4e6   :  { %v977_v44 = vpop.f32.mrb[4].mxu1 }
 0x4e7   :  { %v667_v45 = vpop.f32.mrb[5].mxu1 }
 0x4e8   :  { %v978_v47 = vpop.f32.mrb[6].mxu1 }
 0x4e9   :  { %v700_v48 = vpack.c.bf16 %v978_v47, %v977_v44  ;;  %v670_v49 = vpop.f32.mrb[7].mxu1 }
 0x4ea   :  { %v698_v51 = vpack.c.bf16 %v670_v49, %v667_v45 }
 0x4eb   :  { %702 = vrot.lane.b32.xlu1 %v700_v48, %s1246_s5 }
 0x4ec   :  { %699 = vst.msk [vmem:[#allocation7] sm:$0xff] %vm247_vm1, %v698_v51 }
 0x4ee   :  { %v981_v52 = vpop.f32.mrb[8].mxu1 }
 0x4ef   :  { %v683_v53 = vpop.f32.mrb[9].mxu1 }
 0x4f0   :  { %v982_v54 = vpop.f32.mrb[10].mxu1 }
 0x4f1   :  { %v714_v55 = vpack.c.bf16 %v982_v54, %v981_v52  ;;  %v686_v56 = vpop.f32.mrb[11].mxu1 }
 0x4f2   :  { %v707_v57 = vpack.c.bf16 %v686_v56, %v683_v53 }
 0x4f3   :  { %716 = vrot.lane.b32.xlu1 %v714_v55, %s1247_s17 }
 0x4f4   :  { %709 = vrot.lane.b32.xlu0 %v707_v57, %s1240_s0 }
 0x55d   :  { %v703_v58 = vpop.permute.xlu1 %702 }
 0x55e   :  { %706 = vst.msk [vmem:[#allocation7] sm:$0xff] %vm705_vm3, %v703_v58 }
 0x565   :  { %v717_v59 = vpop.permute.xlu1 %716 }
 0x566   :  { %v710_v0 = vpop.permute.xlu0 %709 }
 0x567   :  { %713 = vst.msk [vmem:[#allocation7] sm:$0xff] %vm712_vm4, %v710_v0 }
 0x568   :  { %720 = vst.msk [vmem:[#allocation7] sm:$0xff] %vm719_vm5, %v717_v59 }
 0x56f   :  { %v721_v60 = vld [vmem:[#allocation7] sm:$0xff] }
 0x570   :  { %1000 = vmatmul.mubr.bf16.vlgmr.msra.gmra.mrb[12].mxu1 %v721_v60 }
 0x643   :  { %v827_v62 = vpop.f32.mrb[12].mxu1 }
 0x644   :  { %v828_v63 = vadd.f32 %v888_v61, %v827_v62  ;;  %v1001_v1 = vpop.f32.mrb[13].mxu1 }
 0x645   :  { %v830_v2 = vpop.f32.mrb[14].mxu1 }
 0x646   :  { %834 = vst [vmem:[#allocation17] sm:$0xff] %v828_v63  ;;  %v831_v3 = vadd.f32 %v888_v61, %v830_v2  ;;  %v1002_v4 = vpop.f32.mrb[15].mxu1 }
 0x648   :  { %835 = vst [vmem:[#allocation17 + $0x8] sm:$0xff] %v831_v3 }
 0x649   :  { %1215 = shalt.err (!%p1212_p2)
}
 0x64a   :  { %s1216_s1 = scalar_lea.hbm %s1495_s7, 256 }
 0x64b   :  { %p1217_p3 = scmp.ne.s32.totalorder %s1495_s7, %s1216_s1  ;;  %p1220_p4 = scmp.lt.u32.totalorder %s1216_s1, %s1495_s7 }
 0x64d   :  { %p1222_p5 = pnand %p1220_p4, %p1217_p3 }
 0x64f   :  { %1225 = shalt.err (!%p1222_p5)
}
 0x650   :  { %847 = dma.vmem_to_hbm [thread:$0]  %s842_s22, 256, %s1495_s7, [#allocation10], %s1236_s13, %s1236_s13, %s1237_s14  }
 0x651   :  { %1232 = dma.done.wait [#allocation10], 256  }
 0x652   :  { %1233 = vsyncadd [#allocation10], 4294967040 }
 0x653   :  { %851 = vsyncpa [#allocation9], 1 }
 0x654   :  { %852 = vsyncpa [#allocation12], 1 }
 0x655   :  { %853 = vsyncpa [#allocation15], 1 }
 0x656   :  { %854 = vsyncpa [#allocation10], 1 }

</bundles_post_ra>
